<compile_context>
chip_gen: v7x
topology: tpu7x:2x2x1
jax: 0.10.0
libtpu: 0.0.40
codegen_flags: <defaults>
</compile_context>

<pallas_src>
import functools

import jax
import jax.numpy as jnp
from jax import lax
from jax.experimental import pallas as pl
from jax.experimental.pallas import tpu as pltpu


_MAX_UNROLLED_ROWS = 64


def _round_up(v, m):
    return -(-v // m) * m


def _for_rows(n_rows, body):
    """Row loop: static unroll for small H, bounded fori_loop for large H."""
    if n_rows <= _MAX_UNROLLED_ROWS:
        for h in range(n_rows):
            body(h)
    else:
        def _body(h, carry):
            body(h)
            return carry
        lax.fori_loop(0, n_rows, _body, 0, unroll=8)


def _pconv3_kernel(w_ref, x_ref, o_ref, xp_ref, stk_ref, acc_ref, *, H, W, C1, C1p):
    """3x3 'same' conv (stride 1, no bias) on one batch element.

    w_ref  : (C1, 9*C1p)    weights, [c_out, (kh*3+kw)*C1p + c_in], zero-padded over c_in
    x_ref  : (Cb, H*W)      lane-dense channel block (first C1 rows are the conv branch)
    o_ref  : (Cb, H*W)      same channel block of the (aliased) output
    xp_ref : (C1, Lext)     flat zero-padded image (halo built here, persists zeros)
    stk_ref: (9*C1p, Lp)    stacked tap operand (9 lane-shifted copies of xp)
    acc_ref: (C1, Lp)       f32 conv result on the padded grid (written once)
    """
    Wp = W + 2
    Lp = (H + 2) * Wp
    off = Wp + 1                       # margin so every tap slice stays in-bounds
    Cb = x_ref.shape[0]

    # Zero the halo ring / margins / K-padding rows exactly once.  Interior
    # regions are overwritten every grid step; everything else is never touched,
    # and the grid is sequential ("arbitrary"), so the zeros persist.
    @pl.when(pl.program_id(0) == 0)
    def _init():
        xp_ref[...] = jnp.zeros_like(xp_ref)
        stk_ref[...] = jnp.zeros_like(stk_ref)

    # --- copy conv-branch rows into the interior of the flat padded image ---
    def copy_in(h):
        xp_ref[:, pl.ds(off + 1 + (h + 1) * Wp, W)] = x_ref[:C1, pl.ds(h * W, W)]
    _for_rows(H, copy_in)

    # --- build the stacked tap operand: one lane-shifted copy per (kh, kw) ---
    for t in range(9):
        kh, kw = t // 3, t % 3
        start = off + (kh - 1) * Wp + (kw - 1)
        stk_ref[t * C1p:t * C1p + C1, :] = xp_ref[:, start:start + Lp]

    # --- single deep-K MXU matmul, f32 result assigned once (no Ref RMW) ---
    acc_ref[...] = jnp.dot(w_ref[...], stk_ref[...],
                           preferred_element_type=jnp.float32)

    # --- extract the valid interior pixels back to lane-dense output rows ---
    def copy_out(h):
        o_ref[:C1, pl.ds(h * W, W)] = acc_ref[
            :, pl.ds((h + 1) * Wp + 1, W)].astype(o_ref.dtype)
    _for_rows(H, copy_out)

    # Pass-through for the few alignment-padding channels carried by the block
    # (channels beyond the block are passed through via the input/output alias).
    if Cb > C1:
        o_ref[C1:, :] = x_ref[C1:, :]


@functools.partial(jax.jit, static_argnames=("n_div",), donate_argnums=(0,))
def partial_conv3(x_nchw, weight_oihw, n_div):
    """Forward pass equivalent to Partial_conv3.forward (NCHW in / NCHW out)."""
    N, C, H, W = x_nchw.shape
    C1 = C // n_div
    C1p = _round_up(C1, 8)            # sublane-aligned per-tap row stride in stk
    Cb = min(C, C1p)                  # channels carried by the HBM-facing block
    Wp = W + 2
    Lp = (H + 2) * Wp
    Lext = Lp + 2 * (Wp + 1)
    HW = H * W

    # Lane-dense HBM-facing layout: (N, C, H*W) is a free view of NCHW.
    x_flat = x_nchw.reshape(N, C, HW)

    # OIHW (C1, C1, 3, 3) -> (C1, 9*C1p): [o, (kh*3+kw)*C1p + i], zero-padded over i.
    w_okki = jnp.transpose(weight_oihw, (0, 2, 3, 1))
    w_okki = jnp.pad(w_okki, ((0, 0), (0, 0), (0, 0), (0, C1p - C1)))
    w2 = w_okki.reshape(C1, 9 * C1p).astype(x_nchw.dtype)

    # Explicit VMEM budget (raised above the v5e 16 MiB scoped default).
    itemsize = jnp.dtype(x_nchw.dtype).itemsize
    scratch_bytes = (C1 * Lext + 9 * C1p * Lp) * itemsize + C1 * Lp * 4
    block_bytes = 2 * 2 * Cb * HW * itemsize + C1 * 9 * C1p * itemsize
    vmem_limit = int(min(96 * 2**20,
                         max(32 * 2**20, 2 * (scratch_bytes + block_bytes))))

    kernel = functools.partial(_pconv3_kernel, H=H, W=W, C1=C1, C1p=C1p)

    out_flat = pl.pallas_call(
        kernel,
        out_shape=jax.ShapeDtypeStruct((N, C, HW), x_nchw.dtype),
        grid_spec=pltpu.PrefetchScalarGridSpec(
            num_scalar_prefetch=0,
            grid=(N,),
            in_specs=[
                pl.BlockSpec((C1, 9 * C1p), lambda n: (0, 0)),
                pl.BlockSpec((None, Cb, HW), lambda n: (n, 0, 0)),
            ],
            out_specs=pl.BlockSpec((None, Cb, HW), lambda n: (n, 0, 0)),
            scratch_shapes=[
                pltpu.VMEM((C1, Lext), x_nchw.dtype),       # flat padded image
                pltpu.VMEM((9 * C1p, Lp), x_nchw.dtype),    # stacked tap operand
                pltpu.VMEM((C1, Lp), jnp.float32),          # f32 conv result
            ],
        ),
        # Untouched channels [Cb:] are never read/written by the kernel; with
        # the donated input the alias makes them pass through with zero traffic.
        input_output_aliases={1: 0},
        compiler_params=pltpu.CompilerParams(
            # "arbitrary" (sequential) so the one-time zero halo ring provably
            # persists across grid steps; parallel-vs-arbitrary is measured
            # ~neutral on single-TensorCore chips.
            dimension_semantics=("arbitrary",),
            vmem_limit_bytes=vmem_limit,
        ),
    )(w2, x_flat)

    return out_flat.reshape(N, C, H, W)


if __name__ == "__main__":
    # Small shapes consistent with the module: dim=16, n_div=4 -> dim_conv3=4.
    N, C, H, W = 2, 16, 16, 16
    n_div = 4
    C1 = C // n_div

    key = jax.random.PRNGKey(0)
    kx, kw_ = jax.random.split(key)
    x = jax.random.normal(kx, (N, C, H, W), dtype=jnp.float32)
    # Deterministic synthetic weights for nn.Conv2d(C1, C1, 3, 1, 1, bias=False).
    fan_in = C1 * 3 * 3
    bound = 1.0 / (fan_in ** 0.5)
    weight = jax.random.uniform(kw_, (C1, C1, 3, 3), jnp.float32, -bound, bound)

    # Reference computed (and materialized) BEFORE the kernel call: x is donated.
    ref_conv = jax.lax.conv_general_dilated(
        x[:, :C1], weight, window_strides=(1, 1), padding=((1, 1), (1, 1)),
        dimension_numbers=("NCHW", "OIHW", "NCHW"),
    )
    ref = jax.block_until_ready(jnp.concatenate((ref_conv, x[:, C1:]), axis=1))

    out = jax.block_until_ready(partial_conv3(x, weight, n_div))

    assert out.shape == (N, C, H, W)
    assert jnp.allclose(out, ref, atol=1e-3, rtol=1e-3)
    print("KERNEL_OK")
</pallas_src>

<mosaic_0001>
module attributes {stable_mosaic.version = 11 : i64} {
  func.func @_pconv3_kernel(%arg0: i32, %arg1: memref<4x72xf32, #tpu.memory_space<vmem>>, %arg2: memref<1x8x256xf32, #tpu.memory_space<vmem>>, %arg3: memref<1x8x256xf32, #tpu.memory_space<vmem>>, %arg4: memref<4x362xf32, #tpu.memory_space<vmem>>, %arg5: memref<72x324xf32, #tpu.memory_space<vmem>>, %arg6: memref<4x324xf32, #tpu.memory_space<vmem>>) attributes {dimension_semantics = [#tpu.dimension_semantics<arbitrary>], iteration_bounds = array<i64: 2>, scalar_prefetch = 0 : i64, scratch_operands = 3 : i64, tpu.core_type = #tpu.core_type<tc>, window_params = [{pipeline_mode = #tpu.pipeline_mode<synchronous>, transform_indices = @transform_0, window_bounds = array<i64: 4, 72>}, {transform_indices = @transform_1, window_bounds = array<i64: 1, 8, 256>}, {transform_indices = @transform_2, window_bounds = array<i64: 1, 8, 256>}]} {
    %c0_i32 = arith.constant 0 : i32
    %0 = arith.cmpi eq, %arg0, %c0_i32 : i32
    %1 = arith.extui %0 : i1 to i32
    %c0_i32_0 = arith.constant 0 : i32
    %2 = arith.cmpi ne, %1, %c0_i32_0 : i32
    scf.if %2 {
      %cst_153 = arith.constant 0.000000e+00 : f32
      %142 = vector.broadcast %cst_153 : f32 to vector<4x362xf32>
      %c0_154 = arith.constant 0 : index
      %c0_155 = arith.constant 0 : index
      %143 = vector.load %arg4[%c0_154, %c0_155] : memref<4x362xf32, #tpu.memory_space<vmem>>, vector<4x362xf32>
      tpu.vector_store %arg4[%c0_154, %c0_155], %142 {strides = array<i32>} : memref<4x362xf32, #tpu.memory_space<vmem>>, vector<4x362xf32>,
      %cst_156 = arith.constant 0.000000e+00 : f32
      %144 = vector.broadcast %cst_156 : f32 to vector<72x324xf32>
      %c0_157 = arith.constant 0 : index
      %c0_158 = arith.constant 0 : index
      %145 = vector.load %arg5[%c0_157, %c0_158] : memref<72x324xf32, #tpu.memory_space<vmem>>, vector<72x324xf32>
      tpu.vector_store %arg5[%c0_157, %c0_158], %144 {strides = array<i32>} : memref<72x324xf32, #tpu.memory_space<vmem>>, vector<72x324xf32>,
    } else {
    }
    %c0 = arith.constant 0 : index
    %c0_1 = arith.constant 0 : index
    %c0_2 = arith.constant 0 : index
    %3 = vector.load %arg2[%c0, %c0_1, %c0_2] : memref<1x8x256xf32, #tpu.memory_space<vmem>>, vector<1x4x16xf32>
    %4 = vector.shape_cast %3 : vector<1x4x16xf32> to vector<4x16xf32>
    %c0_3 = arith.constant 0 : index
    %c38 = arith.constant 38 : index
    %5 = vector.load %arg4[%c0_3, %c38] : memref<4x362xf32, #tpu.memory_space<vmem>>, vector<4x16xf32>
    tpu.vector_store %arg4[%c0_3, %c38], %4 {strides = array<i32>} : memref<4x362xf32, #tpu.memory_space<vmem>>, vector<4x16xf32>,
    %c0_4 = arith.constant 0 : index
    %c0_5 = arith.constant 0 : index
    %c16 = arith.constant 16 : index
    %6 = vector.load %arg2[%c0_4, %c0_5, %c16] : memref<1x8x256xf32, #tpu.memory_space<vmem>>, vector<1x4x16xf32>
    %7 = vector.shape_cast %6 : vector<1x4x16xf32> to vector<4x16xf32>
    %c0_6 = arith.constant 0 : index
    %c56 = arith.constant 56 : index
    %8 = vector.load %arg4[%c0_6, %c56] : memref<4x362xf32, #tpu.memory_space<vmem>>, vector<4x16xf32>
    tpu.vector_store %arg4[%c0_6, %c56], %7 {strides = array<i32>} : memref<4x362xf32, #tpu.memory_space<vmem>>, vector<4x16xf32>,
    %c0_7 = arith.constant 0 : index
    %c0_8 = arith.constant 0 : index
    %c32 = arith.constant 32 : index
    %9 = vector.load %arg2[%c0_7, %c0_8, %c32] : memref<1x8x256xf32, #tpu.memory_space<vmem>>, vector<1x4x16xf32>
    %10 = vector.shape_cast %9 : vector<1x4x16xf32> to vector<4x16xf32>
    %c0_9 = arith.constant 0 : index
    %c74 = arith.constant 74 : index
    %11 = vector.load %arg4[%c0_9, %c74] : memref<4x362xf32, #tpu.memory_space<vmem>>, vector<4x16xf32>
    tpu.vector_store %arg4[%c0_9, %c74], %10 {strides = array<i32>} : memref<4x362xf32, #tpu.memory_space<vmem>>, vector<4x16xf32>,
    %c0_10 = arith.constant 0 : index
    %c0_11 = arith.constant 0 : index
    %c48 = arith.constant 48 : index
    %12 = vector.load %arg2[%c0_10, %c0_11, %c48] : memref<1x8x256xf32, #tpu.memory_space<vmem>>, vector<1x4x16xf32>
    %13 = vector.shape_cast %12 : vector<1x4x16xf32> to vector<4x16xf32>
    %c0_12 = arith.constant 0 : index
    %c92 = arith.constant 92 : index
    %14 = vector.load %arg4[%c0_12, %c92] : memref<4x362xf32, #tpu.memory_space<vmem>>, vector<4x16xf32>
    tpu.vector_store %arg4[%c0_12, %c92], %13 {strides = array<i32>} : memref<4x362xf32, #tpu.memory_space<vmem>>, vector<4x16xf32>,
    %c0_13 = arith.constant 0 : index
    %c0_14 = arith.constant 0 : index
    %c64 = arith.constant 64 : index
    %15 = vector.load %arg2[%c0_13, %c0_14, %c64] : memref<1x8x256xf32, #tpu.memory_space<vmem>>, vector<1x4x16xf32>
    %16 = vector.shape_cast %15 : vector<1x4x16xf32> to vector<4x16xf32>
    %c0_15 = arith.constant 0 : index
    %c110 = arith.constant 110 : index
    %17 = vector.load %arg4[%c0_15, %c110] : memref<4x362xf32, #tpu.memory_space<vmem>>, vector<4x16xf32>
    tpu.vector_store %arg4[%c0_15, %c110], %16 {strides = array<i32>} : memref<4x362xf32, #tpu.memory_space<vmem>>, vector<4x16xf32>,
    %c0_16 = arith.constant 0 : index
    %c0_17 = arith.constant 0 : index
    %c80 = arith.constant 80 : index
    %18 = vector.load %arg2[%c0_16, %c0_17, %c80] : memref<1x8x256xf32, #tpu.memory_space<vmem>>, vector<1x4x16xf32>
    %19 = vector.shape_cast %18 : vector<1x4x16xf32> to vector<4x16xf32>
    %c0_18 = arith.constant 0 : index
    %c128 = arith.constant 128 : index
    %20 = vector.load %arg4[%c0_18, %c128] : memref<4x362xf32, #tpu.memory_space<vmem>>, vector<4x16xf32>
    tpu.vector_store %arg4[%c0_18, %c128], %19 {strides = array<i32>} : memref<4x362xf32, #tpu.memory_space<vmem>>, vector<4x16xf32>,
    %c0_19 = arith.constant 0 : index
    %c0_20 = arith.constant 0 : index
    %c96 = arith.constant 96 : index
    %21 = vector.load %arg2[%c0_19, %c0_20, %c96] : memref<1x8x256xf32, #tpu.memory_space<vmem>>, vector<1x4x16xf32>
    %22 = vector.shape_cast %21 : vector<1x4x16xf32> to vector<4x16xf32>
    %c0_21 = arith.constant 0 : index
    %c146 = arith.constant 146 : index
    %23 = vector.load %arg4[%c0_21, %c146] : memref<4x362xf32, #tpu.memory_space<vmem>>, vector<4x16xf32>
    tpu.vector_store %arg4[%c0_21, %c146], %22 {strides = array<i32>} : memref<4x362xf32, #tpu.memory_space<vmem>>, vector<4x16xf32>,
    %c0_22 = arith.constant 0 : index
    %c0_23 = arith.constant 0 : index
    %c112 = arith.constant 112 : index
    %24 = vector.load %arg2[%c0_22, %c0_23, %c112] : memref<1x8x256xf32, #tpu.memory_space<vmem>>, vector<1x4x16xf32>
    %25 = vector.shape_cast %24 : vector<1x4x16xf32> to vector<4x16xf32>
    %c0_24 = arith.constant 0 : index
    %c164 = arith.constant 164 : index
    %26 = vector.load %arg4[%c0_24, %c164] : memref<4x362xf32, #tpu.memory_space<vmem>>, vector<4x16xf32>
    tpu.vector_store %arg4[%c0_24, %c164], %25 {strides = array<i32>} : memref<4x362xf32, #tpu.memory_space<vmem>>, vector<4x16xf32>,
    %c0_25 = arith.constant 0 : index
    %c0_26 = arith.constant 0 : index
    %c128_27 = arith.constant 128 : index
    %27 = vector.load %arg2[%c0_25, %c0_26, %c128_27] : memref<1x8x256xf32, #tpu.memory_space<vmem>>, vector<1x4x16xf32>
    %28 = vector.shape_cast %27 : vector<1x4x16xf32> to vector<4x16xf32>
    %c0_28 = arith.constant 0 : index
    %c182 = arith.constant 182 : index
    %29 = vector.load %arg4[%c0_28, %c182] : memref<4x362xf32, #tpu.memory_space<vmem>>, vector<4x16xf32>
    tpu.vector_store %arg4[%c0_28, %c182], %28 {strides = array<i32>} : memref<4x362xf32, #tpu.memory_space<vmem>>, vector<4x16xf32>,
    %c0_29 = arith.constant 0 : index
    %c0_30 = arith.constant 0 : index
    %c144 = arith.constant 144 : index
    %30 = vector.load %arg2[%c0_29, %c0_30, %c144] : memref<1x8x256xf32, #tpu.memory_space<vmem>>, vector<1x4x16xf32>
    %31 = vector.shape_cast %30 : vector<1x4x16xf32> to vector<4x16xf32>
    %c0_31 = arith.constant 0 : index
    %c200 = arith.constant 200 : index
    %32 = vector.load %arg4[%c0_31, %c200] : memref<4x362xf32, #tpu.memory_space<vmem>>, vector<4x16xf32>
    tpu.vector_store %arg4[%c0_31, %c200], %31 {strides = array<i32>} : memref<4x362xf32, #tpu.memory_space<vmem>>, vector<4x16xf32>,
    %c0_32 = arith.constant 0 : index
    %c0_33 = arith.constant 0 : index
    %c160 = arith.constant 160 : index
    %33 = vector.load %arg2[%c0_32, %c0_33, %c160] : memref<1x8x256xf32, #tpu.memory_space<vmem>>, vector<1x4x16xf32>
    %34 = vector.shape_cast %33 : vector<1x4x16xf32> to vector<4x16xf32>
    %c0_34 = arith.constant 0 : index
    %c218 = arith.constant 218 : index
    %35 = vector.load %arg4[%c0_34, %c218] : memref<4x362xf32, #tpu.memory_space<vmem>>, vector<4x16xf32>
    tpu.vector_store %arg4[%c0_34, %c218], %34 {strides = array<i32>} : memref<4x362xf32, #tpu.memory_space<vmem>>, vector<4x16xf32>,
    %c0_35 = arith.constant 0 : index
    %c0_36 = arith.constant 0 : index
    %c176 = arith.constant 176 : index
    %36 = vector.load %arg2[%c0_35, %c0_36, %c176] : memref<1x8x256xf32, #tpu.memory_space<vmem>>, vector<1x4x16xf32>
    %37 = vector.shape_cast %36 : vector<1x4x16xf32> to vector<4x16xf32>
    %c0_37 = arith.constant 0 : index
    %c236 = arith.constant 236 : index
    %38 = vector.load %arg4[%c0_37, %c236] : memref<4x362xf32, #tpu.memory_space<vmem>>, vector<4x16xf32>
    tpu.vector_store %arg4[%c0_37, %c236], %37 {strides = array<i32>} : memref<4x362xf32, #tpu.memory_space<vmem>>, vector<4x16xf32>,
    %c0_38 = arith.constant 0 : index
    %c0_39 = arith.constant 0 : index
    %c192 = arith.constant 192 : index
    %39 = vector.load %arg2[%c0_38, %c0_39, %c192] : memref<1x8x256xf32, #tpu.memory_space<vmem>>, vector<1x4x16xf32>
    %40 = vector.shape_cast %39 : vector<1x4x16xf32> to vector<4x16xf32>
    %c0_40 = arith.constant 0 : index
    %c254 = arith.constant 254 : index
    %41 = vector.load %arg4[%c0_40, %c254] : memref<4x362xf32, #tpu.memory_space<vmem>>, vector<4x16xf32>
    tpu.vector_store %arg4[%c0_40, %c254], %40 {strides = array<i32>} : memref<4x362xf32, #tpu.memory_space<vmem>>, vector<4x16xf32>,
    %c0_41 = arith.constant 0 : index
    %c0_42 = arith.constant 0 : index
    %c208 = arith.constant 208 : index
    %42 = vector.load %arg2[%c0_41, %c0_42, %c208] : memref<1x8x256xf32, #tpu.memory_space<vmem>>, vector<1x4x16xf32>
    %43 = vector.shape_cast %42 : vector<1x4x16xf32> to vector<4x16xf32>
    %c0_43 = arith.constant 0 : index
    %c272 = arith.constant 272 : index
    %44 = vector.load %arg4[%c0_43, %c272] : memref<4x362xf32, #tpu.memory_space<vmem>>, vector<4x16xf32>
    tpu.vector_store %arg4[%c0_43, %c272], %43 {strides = array<i32>} : memref<4x362xf32, #tpu.memory_space<vmem>>, vector<4x16xf32>,
    %c0_44 = arith.constant 0 : index
    %c0_45 = arith.constant 0 : index
    %c224 = arith.constant 224 : index
    %45 = vector.load %arg2[%c0_44, %c0_45, %c224] : memref<1x8x256xf32, #tpu.memory_space<vmem>>, vector<1x4x16xf32>
    %46 = vector.shape_cast %45 : vector<1x4x16xf32> to vector<4x16xf32>
    %c0_46 = arith.constant 0 : index
    %c290 = arith.constant 290 : index
    %47 = vector.load %arg4[%c0_46, %c290] : memref<4x362xf32, #tpu.memory_space<vmem>>, vector<4x16xf32>
    tpu.vector_store %arg4[%c0_46, %c290], %46 {strides = array<i32>} : memref<4x362xf32, #tpu.memory_space<vmem>>, vector<4x16xf32>,
    %c0_47 = arith.constant 0 : index
    %c0_48 = arith.constant 0 : index
    %c240 = arith.constant 240 : index
    %48 = vector.load %arg2[%c0_47, %c0_48, %c240] : memref<1x8x256xf32, #tpu.memory_space<vmem>>, vector<1x4x16xf32>
    %49 = vector.shape_cast %48 : vector<1x4x16xf32> to vector<4x16xf32>
    %c0_49 = arith.constant 0 : index
    %c308 = arith.constant 308 : index
    %50 = vector.load %arg4[%c0_49, %c308] : memref<4x362xf32, #tpu.memory_space<vmem>>, vector<4x16xf32>
    tpu.vector_store %arg4[%c0_49, %c308], %49 {strides = array<i32>} : memref<4x362xf32, #tpu.memory_space<vmem>>, vector<4x16xf32>,
    %c0_50 = arith.constant 0 : index
    %c0_51 = arith.constant 0 : index
    %51 = vector.load %arg4[%c0_50, %c0_51] : memref<4x362xf32, #tpu.memory_space<vmem>>, vector<4x324xf32>
    %c0_52 = arith.constant 0 : index
    %c0_53 = arith.constant 0 : index
    %52 = vector.load %arg5[%c0_52, %c0_53] : memref<72x324xf32, #tpu.memory_space<vmem>>, vector<4x324xf32>
    tpu.vector_store %arg5[%c0_52, %c0_53], %51 {strides = array<i32>} : memref<72x324xf32, #tpu.memory_space<vmem>>, vector<4x324xf32>,
    %c0_54 = arith.constant 0 : index
    %c1 = arith.constant 1 : index
    %53 = vector.load %arg4[%c0_54, %c1] : memref<4x362xf32, #tpu.memory_space<vmem>>, vector<4x324xf32>
    %c8 = arith.constant 8 : index
    %c0_55 = arith.constant 0 : index
    %54 = vector.load %arg5[%c8, %c0_55] : memref<72x324xf32, #tpu.memory_space<vmem>>, vector<4x324xf32>
    tpu.vector_store %arg5[%c8, %c0_55], %53 {strides = array<i32>} : memref<72x324xf32, #tpu.memory_space<vmem>>, vector<4x324xf32>,
    %c0_56 = arith.constant 0 : index
    %c2 = arith.constant 2 : index
    %55 = vector.load %arg4[%c0_56, %c2] : memref<4x362xf32, #tpu.memory_space<vmem>>, vector<4x324xf32>
    %c16_57 = arith.constant 16 : index
    %c0_58 = arith.constant 0 : index
    %56 = vector.load %arg5[%c16_57, %c0_58] : memref<72x324xf32, #tpu.memory_space<vmem>>, vector<4x324xf32>
    tpu.vector_store %arg5[%c16_57, %c0_58], %55 {strides = array<i32>} : memref<72x324xf32, #tpu.memory_space<vmem>>, vector<4x324xf32>,
    %c0_59 = arith.constant 0 : index
    %c18 = arith.constant 18 : index
    %57 = vector.load %arg4[%c0_59, %c18] : memref<4x362xf32, #tpu.memory_space<vmem>>, vector<4x324xf32>
    %c24 = arith.constant 24 : index
    %c0_60 = arith.constant 0 : index
    %58 = vector.load %arg5[%c24, %c0_60] : memref<72x324xf32, #tpu.memory_space<vmem>>, vector<4x324xf32>
    tpu.vector_store %arg5[%c24, %c0_60], %57 {strides = array<i32>} : memref<72x324xf32, #tpu.memory_space<vmem>>, vector<4x324xf32>,
    %c0_61 = arith.constant 0 : index
    %c19 = arith.constant 19 : index
    %59 = vector.load %arg4[%c0_61, %c19] : memref<4x362xf32, #tpu.memory_space<vmem>>, vector<4x324xf32>
    %c32_62 = arith.constant 32 : index
    %c0_63 = arith.constant 0 : index
    %60 = vector.load %arg5[%c32_62, %c0_63] : memref<72x324xf32, #tpu.memory_space<vmem>>, vector<4x324xf32>
    tpu.vector_store %arg5[%c32_62, %c0_63], %59 {strides = array<i32>} : memref<72x324xf32, #tpu.memory_space<vmem>>, vector<4x324xf32>,
    %c0_64 = arith.constant 0 : index
    %c20 = arith.constant 20 : index
    %61 = vector.load %arg4[%c0_64, %c20] : memref<4x362xf32, #tpu.memory_space<vmem>>, vector<4x324xf32>
    %c40 = arith.constant 40 : index
    %c0_65 = arith.constant 0 : index
    %62 = vector.load %arg5[%c40, %c0_65] : memref<72x324xf32, #tpu.memory_space<vmem>>, vector<4x324xf32>
    tpu.vector_store %arg5[%c40, %c0_65], %61 {strides = array<i32>} : memref<72x324xf32, #tpu.memory_space<vmem>>, vector<4x324xf32>,
    %c0_66 = arith.constant 0 : index
    %c36 = arith.constant 36 : index
    %63 = vector.load %arg4[%c0_66, %c36] : memref<4x362xf32, #tpu.memory_space<vmem>>, vector<4x324xf32>
    %c48_67 = arith.constant 48 : index
    %c0_68 = arith.constant 0 : index
    %64 = vector.load %arg5[%c48_67, %c0_68] : memref<72x324xf32, #tpu.memory_space<vmem>>, vector<4x324xf32>
    tpu.vector_store %arg5[%c48_67, %c0_68], %63 {strides = array<i32>} : memref<72x324xf32, #tpu.memory_space<vmem>>, vector<4x324xf32>,
    %c0_69 = arith.constant 0 : index
    %c37 = arith.constant 37 : index
    %65 = vector.load %arg4[%c0_69, %c37] : memref<4x362xf32, #tpu.memory_space<vmem>>, vector<4x324xf32>
    %c56_70 = arith.constant 56 : index
    %c0_71 = arith.constant 0 : index
    %66 = vector.load %arg5[%c56_70, %c0_71] : memref<72x324xf32, #tpu.memory_space<vmem>>, vector<4x324xf32>
    tpu.vector_store %arg5[%c56_70, %c0_71], %65 {strides = array<i32>} : memref<72x324xf32, #tpu.memory_space<vmem>>, vector<4x324xf32>,
    %c0_72 = arith.constant 0 : index
    %c38_73 = arith.constant 38 : index
    %67 = vector.load %arg4[%c0_72, %c38_73] : memref<4x362xf32, #tpu.memory_space<vmem>>, vector<4x324xf32>
    %c64_74 = arith.constant 64 : index
    %c0_75 = arith.constant 0 : index
    %68 = vector.load %arg5[%c64_74, %c0_75] : memref<72x324xf32, #tpu.memory_space<vmem>>, vector<4x324xf32>
    tpu.vector_store %arg5[%c64_74, %c0_75], %67 {strides = array<i32>} : memref<72x324xf32, #tpu.memory_space<vmem>>, vector<4x324xf32>,
    %c0_76 = arith.constant 0 : index
    %c0_77 = arith.constant 0 : index
    %69 = vector.load %arg1[%c0_76, %c0_77] : memref<4x72xf32, #tpu.memory_space<vmem>>, vector<4x72xf32>
    %c0_78 = arith.constant 0 : index
    %c0_79 = arith.constant 0 : index
    %70 = vector.load %arg5[%c0_78, %c0_79] : memref<72x324xf32, #tpu.memory_space<vmem>>, vector<72x324xf32>
    %cst = arith.constant dense<0.000000e+00> : vector<4x324xf32>
    %71 = tpu.matmul %69, %70, %cst {dimension_numbers = #tpu.dot_dimension_numbers<[1], [0], [0], [1], [0, 0, 1, 1], [], []>} : vector<4x72xf32>, vector<72x324xf32>, vector<4x324xf32> -> vector<4x324xf32>
    %c0_80 = arith.constant 0 : index
    %c0_81 = arith.constant 0 : index
    %72 = vector.load %arg6[%c0_80, %c0_81] : memref<4x324xf32, #tpu.memory_space<vmem>>, vector<4x324xf32>
    tpu.vector_store %arg6[%c0_80, %c0_81], %71 {strides = array<i32>} : memref<4x324xf32, #tpu.memory_space<vmem>>, vector<4x324xf32>,
    %c0_82 = arith.constant 0 : index
    %c19_83 = arith.constant 19 : index
    %73 = vector.load %arg6[%c0_82, %c19_83] : memref<4x324xf32, #tpu.memory_space<vmem>>, vector<4x16xf32>
    %c0_84 = arith.constant 0 : index
    %c0_85 = arith.constant 0 : index
    %c0_86 = arith.constant 0 : index
    %74 = vector.load %arg3[%c0_84, %c0_85, %c0_86] : memref<1x8x256xf32, #tpu.memory_space<vmem>>, vector<1x4x16xf32>
    %75 = vector.shape_cast %74 : vector<1x4x16xf32> to vector<4x16xf32>
    %76 = vector.shape_cast %73 : vector<4x16xf32> to vector<1x4x16xf32>
    tpu.vector_store %arg3[%c0_84, %c0_85, %c0_86], %76 {strides = array<i32>} : memref<1x8x256xf32, #tpu.memory_space<vmem>>, vector<1x4x16xf32>,
    %c0_87 = arith.constant 0 : index
    %c37_88 = arith.constant 37 : index
    %77 = vector.load %arg6[%c0_87, %c37_88] : memref<4x324xf32, #tpu.memory_space<vmem>>, vector<4x16xf32>
    %c0_89 = arith.constant 0 : index
    %c0_90 = arith.constant 0 : index
    %c16_91 = arith.constant 16 : index
    %78 = vector.load %arg3[%c0_89, %c0_90, %c16_91] : memref<1x8x256xf32, #tpu.memory_space<vmem>>, vector<1x4x16xf32>
    %79 = vector.shape_cast %78 : vector<1x4x16xf32> to vector<4x16xf32>
    %80 = vector.shape_cast %77 : vector<4x16xf32> to vector<1x4x16xf32>
    tpu.vector_store %arg3[%c0_89, %c0_90, %c16_91], %80 {strides = array<i32>} : memref<1x8x256xf32, #tpu.memory_space<vmem>>, vector<1x4x16xf32>,
    %c0_92 = arith.constant 0 : index
    %c55 = arith.constant 55 : index
    %81 = vector.load %arg6[%c0_92, %c55] : memref<4x324xf32, #tpu.memory_space<vmem>>, vector<4x16xf32>
    %c0_93 = arith.constant 0 : index
    %c0_94 = arith.constant 0 : index
    %c32_95 = arith.constant 32 : index
    %82 = vector.load %arg3[%c0_93, %c0_94, %c32_95] : memref<1x8x256xf32, #tpu.memory_space<vmem>>, vector<1x4x16xf32>
    %83 = vector.shape_cast %82 : vector<1x4x16xf32> to vector<4x16xf32>
    %84 = vector.shape_cast %81 : vector<4x16xf32> to vector<1x4x16xf32>
    tpu.vector_store %arg3[%c0_93, %c0_94, %c32_95], %84 {strides = array<i32>} : memref<1x8x256xf32, #tpu.memory_space<vmem>>, vector<1x4x16xf32>,
    %c0_96 = arith.constant 0 : index
    %c73 = arith.constant 73 : index
    %85 = vector.load %arg6[%c0_96, %c73] : memref<4x324xf32, #tpu.memory_space<vmem>>, vector<4x16xf32>
    %c0_97 = arith.constant 0 : index
    %c0_98 = arith.constant 0 : index
    %c48_99 = arith.constant 48 : index
    %86 = vector.load %arg3[%c0_97, %c0_98, %c48_99] : memref<1x8x256xf32, #tpu.memory_space<vmem>>, vector<1x4x16xf32>
    %87 = vector.shape_cast %86 : vector<1x4x16xf32> to vector<4x16xf32>
    %88 = vector.shape_cast %85 : vector<4x16xf32> to vector<1x4x16xf32>
    tpu.vector_store %arg3[%c0_97, %c0_98, %c48_99], %88 {strides = array<i32>} : memref<1x8x256xf32, #tpu.memory_space<vmem>>, vector<1x4x16xf32>,
    %c0_100 = arith.constant 0 : index
    %c91 = arith.constant 91 : index
    %89 = vector.load %arg6[%c0_100, %c91] : memref<4x324xf32, #tpu.memory_space<vmem>>, vector<4x16xf32>
    %c0_101 = arith.constant 0 : index
    %c0_102 = arith.constant 0 : index
    %c64_103 = arith.constant 64 : index
    %90 = vector.load %arg3[%c0_101, %c0_102, %c64_103] : memref<1x8x256xf32, #tpu.memory_space<vmem>>, vector<1x4x16xf32>
    %91 = vector.shape_cast %90 : vector<1x4x16xf32> to vector<4x16xf32>
    %92 = vector.shape_cast %89 : vector<4x16xf32> to vector<1x4x16xf32>
    tpu.vector_store %arg3[%c0_101, %c0_102, %c64_103], %92 {strides = array<i32>} : memref<1x8x256xf32, #tpu.memory_space<vmem>>, vector<1x4x16xf32>,
    %c0_104 = arith.constant 0 : index
    %c109 = arith.constant 109 : index
    %93 = vector.load %arg6[%c0_104, %c109] : memref<4x324xf32, #tpu.memory_space<vmem>>, vector<4x16xf32>
    %c0_105 = arith.constant 0 : index
    %c0_106 = arith.constant 0 : index
    %c80_107 = arith.constant 80 : index
    %94 = vector.load %arg3[%c0_105, %c0_106, %c80_107] : memref<1x8x256xf32, #tpu.memory_space<vmem>>, vector<1x4x16xf32>
    %95 = vector.shape_cast %94 : vector<1x4x16xf32> to vector<4x16xf32>
    %96 = vector.shape_cast %93 : vector<4x16xf32> to vector<1x4x16xf32>
    tpu.vector_store %arg3[%c0_105, %c0_106, %c80_107], %96 {strides = array<i32>} : memref<1x8x256xf32, #tpu.memory_space<vmem>>, vector<1x4x16xf32>,
    %c0_108 = arith.constant 0 : index
    %c127 = arith.constant 127 : index
    %97 = vector.load %arg6[%c0_108, %c127] : memref<4x324xf32, #tpu.memory_space<vmem>>, vector<4x16xf32>
    %c0_109 = arith.constant 0 : index
    %c0_110 = arith.constant 0 : index
    %c96_111 = arith.constant 96 : index
    %98 = vector.load %arg3[%c0_109, %c0_110, %c96_111] : memref<1x8x256xf32, #tpu.memory_space<vmem>>, vector<1x4x16xf32>
    %99 = vector.shape_cast %98 : vector<1x4x16xf32> to vector<4x16xf32>
    %100 = vector.shape_cast %97 : vector<4x16xf32> to vector<1x4x16xf32>
    tpu.vector_store %arg3[%c0_109, %c0_110, %c96_111], %100 {strides = array<i32>} : memref<1x8x256xf32, #tpu.memory_space<vmem>>, vector<1x4x16xf32>,
    %c0_112 = arith.constant 0 : index
    %c145 = arith.constant 145 : index
    %101 = vector.load %arg6[%c0_112, %c145] : memref<4x324xf32, #tpu.memory_space<vmem>>, vector<4x16xf32>
    %c0_113 = arith.constant 0 : index
    %c0_114 = arith.constant 0 : index
    %c112_115 = arith.constant 112 : index
    %102 = vector.load %arg3[%c0_113, %c0_114, %c112_115] : memref<1x8x256xf32, #tpu.memory_space<vmem>>, vector<1x4x16xf32>
    %103 = vector.shape_cast %102 : vector<1x4x16xf32> to vector<4x16xf32>
    %104 = vector.shape_cast %101 : vector<4x16xf32> to vector<1x4x16xf32>
    tpu.vector_store %arg3[%c0_113, %c0_114, %c112_115], %104 {strides = array<i32>} : memref<1x8x256xf32, #tpu.memory_space<vmem>>, vector<1x4x16xf32>,
    %c0_116 = arith.constant 0 : index
    %c163 = arith.constant 163 : index
    %105 = vector.load %arg6[%c0_116, %c163] : memref<4x324xf32, #tpu.memory_space<vmem>>, vector<4x16xf32>
    %c0_117 = arith.constant 0 : index
    %c0_118 = arith.constant 0 : index
    %c128_119 = arith.constant 128 : index
    %106 = vector.load %arg3[%c0_117, %c0_118, %c128_119] : memref<1x8x256xf32, #tpu.memory_space<vmem>>, vector<1x4x16xf32>
    %107 = vector.shape_cast %106 : vector<1x4x16xf32> to vector<4x16xf32>
    %108 = vector.shape_cast %105 : vector<4x16xf32> to vector<1x4x16xf32>
    tpu.vector_store %arg3[%c0_117, %c0_118, %c128_119], %108 {strides = array<i32>} : memref<1x8x256xf32, #tpu.memory_space<vmem>>, vector<1x4x16xf32>,
    %c0_120 = arith.constant 0 : index
    %c181 = arith.constant 181 : index
    %109 = vector.load %arg6[%c0_120, %c181] : memref<4x324xf32, #tpu.memory_space<vmem>>, vector<4x16xf32>
    %c0_121 = arith.constant 0 : index
    %c0_122 = arith.constant 0 : index
    %c144_123 = arith.constant 144 : index
    %110 = vector.load %arg3[%c0_121, %c0_122, %c144_123] : memref<1x8x256xf32, #tpu.memory_space<vmem>>, vector<1x4x16xf32>
    %111 = vector.shape_cast %110 : vector<1x4x16xf32> to vector<4x16xf32>
    %112 = vector.shape_cast %109 : vector<4x16xf32> to vector<1x4x16xf32>
    tpu.vector_store %arg3[%c0_121, %c0_122, %c144_123], %112 {strides = array<i32>} : memref<1x8x256xf32, #tpu.memory_space<vmem>>, vector<1x4x16xf32>,
    %c0_124 = arith.constant 0 : index
    %c199 = arith.constant 199 : index
    %113 = vector.load %arg6[%c0_124, %c199] : memref<4x324xf32, #tpu.memory_space<vmem>>, vector<4x16xf32>
    %c0_125 = arith.constant 0 : index
    %c0_126 = arith.constant 0 : index
    %c160_127 = arith.constant 160 : index
    %114 = vector.load %arg3[%c0_125, %c0_126, %c160_127] : memref<1x8x256xf32, #tpu.memory_space<vmem>>, vector<1x4x16xf32>
    %115 = vector.shape_cast %114 : vector<1x4x16xf32> to vector<4x16xf32>
    %116 = vector.shape_cast %113 : vector<4x16xf32> to vector<1x4x16xf32>
    tpu.vector_store %arg3[%c0_125, %c0_126, %c160_127], %116 {strides = array<i32>} : memref<1x8x256xf32, #tpu.memory_space<vmem>>, vector<1x4x16xf32>,
    %c0_128 = arith.constant 0 : index
    %c217 = arith.constant 217 : index
    %117 = vector.load %arg6[%c0_128, %c217] : memref<4x324xf32, #tpu.memory_space<vmem>>, vector<4x16xf32>
    %c0_129 = arith.constant 0 : index
    %c0_130 = arith.constant 0 : index
    %c176_131 = arith.constant 176 : index
    %118 = vector.load %arg3[%c0_129, %c0_130, %c176_131] : memref<1x8x256xf32, #tpu.memory_space<vmem>>, vector<1x4x16xf32>
    %119 = vector.shape_cast %118 : vector<1x4x16xf32> to vector<4x16xf32>
    %120 = vector.shape_cast %117 : vector<4x16xf32> to vector<1x4x16xf32>
    tpu.vector_store %arg3[%c0_129, %c0_130, %c176_131], %120 {strides = array<i32>} : memref<1x8x256xf32, #tpu.memory_space<vmem>>, vector<1x4x16xf32>,
    %c0_132 = arith.constant 0 : index
    %c235 = arith.constant 235 : index
    %121 = vector.load %arg6[%c0_132, %c235] : memref<4x324xf32, #tpu.memory_space<vmem>>, vector<4x16xf32>
    %c0_133 = arith.constant 0 : index
    %c0_134 = arith.constant 0 : index
    %c192_135 = arith.constant 192 : index
    %122 = vector.load %arg3[%c0_133, %c0_134, %c192_135] : memref<1x8x256xf32, #tpu.memory_space<vmem>>, vector<1x4x16xf32>
    %123 = vector.shape_cast %122 : vector<1x4x16xf32> to vector<4x16xf32>
    %124 = vector.shape_cast %121 : vector<4x16xf32> to vector<1x4x16xf32>
    tpu.vector_store %arg3[%c0_133, %c0_134, %c192_135], %124 {strides = array<i32>} : memref<1x8x256xf32, #tpu.memory_space<vmem>>, vector<1x4x16xf32>,
    %c0_136 = arith.constant 0 : index
    %c253 = arith.constant 253 : index
    %125 = vector.load %arg6[%c0_136, %c253] : memref<4x324xf32, #tpu.memory_space<vmem>>, vector<4x16xf32>
    %c0_137 = arith.constant 0 : index
    %c0_138 = arith.constant 0 : index
    %c208_139 = arith.constant 208 : index
    %126 = vector.load %arg3[%c0_137, %c0_138, %c208_139] : memref<1x8x256xf32, #tpu.memory_space<vmem>>, vector<1x4x16xf32>
    %127 = vector.shape_cast %126 : vector<1x4x16xf32> to vector<4x16xf32>
    %128 = vector.shape_cast %125 : vector<4x16xf32> to vector<1x4x16xf32>
    tpu.vector_store %arg3[%c0_137, %c0_138, %c208_139], %128 {strides = array<i32>} : memref<1x8x256xf32, #tpu.memory_space<vmem>>, vector<1x4x16xf32>,
    %c0_140 = arith.constant 0 : index
    %c271 = arith.constant 271 : index
    %129 = vector.load %arg6[%c0_140, %c271] : memref<4x324xf32, #tpu.memory_space<vmem>>, vector<4x16xf32>
    %c0_141 = arith.constant 0 : index
    %c0_142 = arith.constant 0 : index
    %c224_143 = arith.constant 224 : index
    %130 = vector.load %arg3[%c0_141, %c0_142, %c224_143] : memref<1x8x256xf32, #tpu.memory_space<vmem>>, vector<1x4x16xf32>
    %131 = vector.shape_cast %130 : vector<1x4x16xf32> to vector<4x16xf32>
    %132 = vector.shape_cast %129 : vector<4x16xf32> to vector<1x4x16xf32>
    tpu.vector_store %arg3[%c0_141, %c0_142, %c224_143], %132 {strides = array<i32>} : memref<1x8x256xf32, #tpu.memory_space<vmem>>, vector<1x4x16xf32>,
    %c0_144 = arith.constant 0 : index
    %c289 = arith.constant 289 : index
    %133 = vector.load %arg6[%c0_144, %c289] : memref<4x324xf32, #tpu.memory_space<vmem>>, vector<4x16xf32>
    %c0_145 = arith.constant 0 : index
    %c0_146 = arith.constant 0 : index
    %c240_147 = arith.constant 240 : index
    %134 = vector.load %arg3[%c0_145, %c0_146, %c240_147] : memref<1x8x256xf32, #tpu.memory_space<vmem>>, vector<1x4x16xf32>
    %135 = vector.shape_cast %134 : vector<1x4x16xf32> to vector<4x16xf32>
    %136 = vector.shape_cast %133 : vector<4x16xf32> to vector<1x4x16xf32>
    tpu.vector_store %arg3[%c0_145, %c0_146, %c240_147], %136 {strides = array<i32>} : memref<1x8x256xf32, #tpu.memory_space<vmem>>, vector<1x4x16xf32>,
    %c0_148 = arith.constant 0 : index
    %c4 = arith.constant 4 : index
    %c0_149 = arith.constant 0 : index
    %137 = vector.load %arg2[%c0_148, %c4, %c0_149] : memref<1x8x256xf32, #tpu.memory_space<vmem>>, vector<1x4x256xf32>
    %138 = vector.shape_cast %137 : vector<1x4x256xf32> to vector<4x256xf32>
    %c0_150 = arith.constant 0 : index
    %c4_151 = arith.constant 4 : index
    %c0_152 = arith.constant 0 : index
    %139 = vector.load %arg3[%c0_150, %c4_151, %c0_152] : memref<1x8x256xf32, #tpu.memory_space<vmem>>, vector<1x4x256xf32>
    %140 = vector.shape_cast %139 : vector<1x4x256xf32> to vector<4x256xf32>
    %141 = vector.shape_cast %138 : vector<4x256xf32> to vector<1x4x256xf32>
    tpu.vector_store %arg3[%c0_150, %c4_151, %c0_152], %141 {strides = array<i32>} : memref<1x8x256xf32, #tpu.memory_space<vmem>>, vector<1x4x256xf32>,
    return
  }
  func.func @transform_0(%arg0: i32) -> (i32, i32) {
    %c0_i32 = arith.constant 0 : i32
    %c0_i32_0 = arith.constant 0 : i32
    %c0_i32_1 = arith.constant 0 : i32
    return %c0_i32, %c0_i32_0 : i32, i32
  }
  func.func @transform_1(%arg0: i32) -> (i32, i32, i32) {
    %c0_i32 = arith.constant 0 : i32
    %c0_i32_0 = arith.constant 0 : i32
    %c0_i32_1 = arith.constant 0 : i32
    return %arg0, %c0_i32, %c0_i32_0 : i32, i32, i32
  }
  func.func @transform_2(%arg0: i32) -> (i32, i32, i32) {
    %c0_i32 = arith.constant 0 : i32
    %c0_i32_0 = arith.constant 0 : i32
    %c0_i32_1 = arith.constant 0 : i32
    return %arg0, %c0_i32, %c0_i32_0 : i32, i32, i32
  }
}

</mosaic_0001>

<bundles_post_ra>
// kernel: partial_conv3.1
= control target key start
LH: loop header
LB: loop body
LE: loop exit
PB: predicated region body
PF: predicated region fallthrough
CT: control target
= control target key end

     0   :  { %s1008_s9 = smov 0   ;;  %s1123_s0 = inlined_call_operand.vmem [shape: f32[4,72], index: 0, kind: input, shape index: {}]   ;;  %s1124_s1 = inlined_call_operand.vmem [shape: f32[2,16,256], index: 1, kind: input, shape index: {}, may-alias: {1,2}]   ;;  %s1125_s2 = inlined_call_operand.vmem [shape: f32[2,16,256], index: 2, kind: output, shape index: {}, may-alias: {1,2}]  }
   0x1 LB: > { %s815_s10 = sadd.s32 4294967295, %s949_s9   ;;  %p819_p0 = scmp.ge.s32.totalorder %s949_s9, 1  ;;  %s949_s9 = sphi %s1008_s9, %s12_s9  }
   0x2   : > { %p112_p1 = scmp.lt.s32.totalorder %s949_s9, 3 }
   0x4   : > { %p113_p2 = pnand %p819_p0, %p112_p1 }
   0x5   : > { %p134_p3 = scmp.lt.s32.totalorder (!%p113_p2), %s815_s10, 1  ;;  %p824_p4 = scmp.ne.s32.totalorder (!%p113_p2), %s815_s10, 0 }
   0x6   : > { %116 = sbr.rel (%p113_p2) target bundleno = 728 (0x2d8), region = 28 }
   0xd   : > { %s135_s11 = scalar_select %p134_p3, %s815_s10, 1 }
   0xe   : > { %147 = sbr.rel (%p824_p4) target bundleno = 30 (0x1e), region = 32  ;;  %vm149_vm0 = vcmask (!%p824_p4), 863232   ;;  %vm153_vm1 = vcmask (!%p824_p4), 556032   ;;  %v951_v0 = vmov (!%p824_p4), 0.0  }
   0xf   : > { %s829_s12 = sshll.u32 %s135_s11, 5  ;;  %148 = vst [vmem:[#allocation2] sm:$0xff] (!%p824_p4), %v951_v0  ;;  %151 = vst [vmem:[#allocation3] sm:$0xff] (!%p824_p4), %v951_v0 }
  0x10   : > { %s1019_s15 = scalar_lea.vmem %s1124_s1, %s829_s12  ;;  %s1024_s18 = scalar_lea.vmem %s1125_s2, %s829_s12  ;;  %152 = vst [vmem:[#allocation3 + $0x8] sm:$0xff] (!%p824_p4), %v951_v0  ;;  %155 = vst [vmem:[#allocation3 + $0x18] sm:$0xff] (!%p824_p4), %v951_v0 }
  0x11   : > { %156 = vst [vmem:[#allocation3 + $0x20] sm:$0xff] (!%p824_p4), %v951_v0  ;;  %158 = vst [vmem:[#allocation3 + $0x30] sm:$0xff] (!%p824_p4), %v951_v0 }
  0x12   : > { %159 = vst [vmem:[#allocation3 + $0x38] sm:$0xff] (!%p824_p4), %v951_v0  ;;  %161 = vst [vmem:[#allocation3 + $0x48] sm:$0xff] (!%p824_p4), %v951_v0 }
  0x13   : > { %162 = vst [vmem:[#allocation3 + $0x50] sm:$0xff] (!%p824_p4), %v951_v0  ;;  %164 = vst [vmem:[#allocation3 + $0x60] sm:$0xff] (!%p824_p4), %v951_v0 }
  0x14   : > { %165 = vst [vmem:[#allocation3 + $0x68] sm:$0xff] (!%p824_p4), %v951_v0  ;;  %167 = vst [vmem:[#allocation3 + $0x78] sm:$0xff] (!%p824_p4), %v951_v0 }
  0x15   : > { %168 = vst [vmem:[#allocation3 + $0x80] sm:$0xff] %v951_v0  ;;  %170 = vst [vmem:[#allocation3 + $0x90] sm:$0xff] %v951_v0 }
  0x16   : > { %171 = vst [vmem:[#allocation3 + $0x98] sm:$0xff] %v951_v0  ;;  %173 = vst [vmem:[#allocation3 + $0xa8] sm:$0xff] %v951_v0 }
  0x17   : > { %174 = vst [vmem:[#allocation3 + $0xb0] sm:$0xff] %v951_v0  ;;  %176 = vst [vmem:[#allocation3 + $0xc0] sm:$0xff] %v951_v0 }
  0x18   : > { %177 = vst [vmem:[#allocation3 + $0xc8] sm:$0xff] %v951_v0  ;;  %150 = vst.msk [vmem:[#allocation2 + $0x8] sm:$0xf] %vm149_vm0, %v951_v0 }
  0x19   : > { %154 = vst.msk [vmem:[#allocation3 + $0x10] sm:$0xff] %vm153_vm1, %v951_v0  ;;  %157 = vst.msk [vmem:[#allocation3 + $0x28] sm:$0xff] %vm153_vm1, %v951_v0 }
  0x1a   : > { %160 = vst.msk [vmem:[#allocation3 + $0x40] sm:$0xff] %vm153_vm1, %v951_v0  ;;  %163 = vst.msk [vmem:[#allocation3 + $0x58] sm:$0xff] %vm153_vm1, %v951_v0 }
  0x1b   : > { %166 = vst.msk [vmem:[#allocation3 + $0x70] sm:$0xff] %vm153_vm1, %v951_v0  ;;  %169 = vst.msk [vmem:[#allocation3 + $0x88] sm:$0xff] %vm153_vm1, %v951_v0 }
  0x1c   : > { %172 = vst.msk [vmem:[#allocation3 + $0xa0] sm:$0xff] %vm153_vm1, %v951_v0  ;;  %175 = vst.msk [vmem:[#allocation3 + $0xb8] sm:$0xff] %vm153_vm1, %v951_v0 }
  0x1d   : > { %178 = vst.msk [vmem:[#allocation3 + $0xd0] sm:$0xff] %vm153_vm1, %v951_v0 }
  0x1e PF: > { %v214_v1 = vld [vmem:[%s1019_s15] sm:$0xf]  ;;  %s952_s19 = smov 48   ;;  %s953_s20 = smov 52   ;;  %v235_v4 = vld [vmem:[%s1019_s15 + $0x8] sm:$0xf] }
  0x1f   : > { %v228_v2 = vld [vmem:[%s1019_s15] sm:$0xf]  ;;  %216 = vrot.lane.b32.xlu0 %v214_v1, %s952_s19  ;;  %s954_s21 = smov 50   ;;  %s955_s22 = smov 54   ;;  %v242_v6 = vld [vmem:[%s1019_s15 + $0x8] sm:$0xf] }
  0x20   : > { %230 = vrot.lane.b32.xlu1 %v228_v2, %s953_s20  ;;  %v221_v3 = vld [vmem:[%s1019_s15] sm:$0xf]  ;;  %s956_s23 = smov 38   ;;  %s957_s24 = smov 56   ;;  %v263_v7 = vld [vmem:[%s1019_s15 + $0x8] sm:$0xf] }
  0x21   : > { %v179_v5 = vld [vmem:[%s1019_s15] sm:$0xf]  ;;  %s958_s25 = smov 62   ;;  %s959_s26 = smov 40   ;;  %v249_v9 = vld [vmem:[%s1019_s15 + $0x8] sm:$0xf] }
  0x22   : > { %v186_v8 = vld [vmem:[%s1019_s15] sm:$0xf]  ;;  %s960_s27 = smov 58   ;;  %s961_s28 = smov 42   ;;  %v256_v11 = vld [vmem:[%s1019_s15 + $0x8] sm:$0xf] }
  0x23   : > { %223 = vrot.lane.b32.xlu0 %v221_v3, %s954_s21  ;;  %v193_v10 = vld [vmem:[%s1019_s15] sm:$0xf]  ;;  %s962_s29 = smov 60   ;;  %s963_s30 = smov 44   ;;  %v275_v14 = vld [vmem:[%s1019_s15 + $0x8] sm:$0xf] }
  0x24   : > { %237 = vrot.lane.b32.xlu1 %v235_v4, %s955_s22  ;;  %v200_v12 = vld [vmem:[%s1019_s15] sm:$0xf]  ;;  %s964_s3 = smov 46   ;;  %s965_s4 = smov 64   ;;  %v282_v15 = vld [vmem:[%s1019_s15 + $0x8] sm:$0xf] }
  0x25   : > { %v207_v13 = vld [vmem:[%s1019_s15] sm:$0xf]  ;;  %v289_v16 = vld [vmem:[%s1019_s15 + $0x8] sm:$0xf]  ;;  %s966_s5 = smov 66   ;;  %s967_s6 = smov 68  }
  0x26   : > { %vm219_vm2 = vcmask 125952   ;;  %vm226_vm3 = vcmask 273552   ;;  %vm233_vm4 = vcmask 421152   ;;  %vm240_vm5 = vcmask 568752   ;;  %s968_s7 = smov 126   ;;  %s969_s8 = smov 127  }
  0x27   : > { %181 = vrot.lane.b32.xlu0 %v179_v5, %s956_s23  ;;  %vm184_vm6 = vcmask 437552   ;;  %vm247_vm7 = vcmask 716352   ;;  %vm191_vm8 = vcmask 585152   ;;  %vm254_vm9 = vcmask 863952   ;;  %s970_s10 = smov 109   ;;  %s971_s11 = smov 110  }
  0x28   : > { %244 = vrot.lane.b32.xlu1 %v242_v6, %s957_s24  ;;  %vm198_vm10 = vcmask 732752   ;;  %vm271_vm11 = vcmask 1044464   ;;  %vm272_vm12 = vcmask 113668   ;;  %vm268_vm13 = vcmask 506880   ;;  %s972_s12 = smov 108   ;;  %s974_s13 = smov 92  }
  0x29   : > { %vm261_vm14 = vcmask 1011552   ;;  %vm205_vm15 = vcmask 880352   ;;  %vm273_vm0 = vmor %vm272_vm12, %vm271_vm11  ;;  %vm212_vm1 = vcmask 1027952   ;;  %v973_v40 = vmov 0.0|0.0   ;;  %s975_s14 = smov 91   ;;  %s977_s16 = smov 90  }
  0x2a   : > { %878 = vmatprep.subr.bf16.mxu1 %v973_v40  ;;  %v976_v46 = vmov 0.0   ;;  %vm376_vm11 = vcmask 891904   ;;  %vm396_vm12 = vcmask 883712   ;;  %s979_s20 = smov 81   ;;  %s980_s21 = smov 93  }
  0x2b   : > { %265 = vrot.lane.b32.xlu0 %v263_v7, %s958_s25  ;;  %561 = vmatprep.mubr.f32.mxu0 %v976_v46  ;;  %s981_s22 = smov 107   ;;  %s982_s23 = smov 89  }
  0x2c   : > { %188 = vrot.lane.b32.xlu1 %v186_v8, %s959_s26  ;;  %s983_s24 = smov 105   ;;  %s984_s25 = smov 87  }
  0x2d   : > { %s985_s26 = smov 103  }
  0x2f   : > { %251 = vrot.lane.b32.xlu0 %v249_v9, %s960_s27  ;;  %s986_s27 = smov 85  }
  0x30   : > { %195 = vrot.lane.b32.xlu1 %v193_v10, %s961_s28  ;;  %s987_s28 = smov 101  }
  0x33   : > { %258 = vrot.lane.b32.xlu0 %v256_v11, %s962_s29  ;;  %s988_s29 = smov 97  }
  0x34   : > { %202 = vrot.lane.b32.xlu1 %v200_v12, %s963_s30  ;;  %s989_s30 = smov 83  }
  0x37   : > { %209 = vrot.lane.b32.xlu0 %v207_v13, %s964_s3  ;;  %s990_s3 = smov 99  }
  0x38   : > { %277 = vrot.lane.b32.xlu1 %v275_v14, %s965_s4  ;;  %s991_s4 = smov 79  }
  0x3b   : > { %284 = vrot.lane.b32.xlu0 %v282_v15, %s966_s5  ;;  %s992_s5 = smov 95  }
  0x3c   : > { %291 = vrot.lane.b32.xlu1 %v289_v16, %s967_s6 }
  0x91   : > { %v217_v17 = vpop.permute.xlu0 %216 }
  0x92   : > { %v231_v18 = vpop.permute.xlu1 %230  ;;  %220 = vst.msk [vmem:[#allocation2 + $0x4] sm:$0xf] %vm219_vm2, %v217_v17 }
  0x95   : > { %v224_v19 = vpop.permute.xlu0 %223 }
  0x96   : > { %v238_v20 = vpop.permute.xlu1 %237  ;;  %227 = vst.msk [vmem:[#allocation2 + $0x4] sm:$0xf] %vm226_vm3, %v224_v19  ;;  %vm280_vm3 = vcmask 257152  }
  0x97   : > { %234 = vst.msk [vmem:[#allocation2 + $0x4] sm:$0xf] %vm233_vm4, %v231_v18  ;;  %vm287_vm4 = vcmask 404752  }
  0x98   : > { %241 = vst.msk [vmem:[#allocation2 + $0x4] sm:$0xf] %vm240_vm5, %v238_v20  ;;  %vm294_vm5 = vcmask 552352  }
  0x99   : > { %v182_v21 = vpop.permute.xlu0 %181 }
  0x9a   : > { %v245_v22 = vpop.permute.xlu1 %244  ;;  %185 = vst.msk [vmem:[#allocation2] sm:$0xf] %vm184_vm6, %v182_v21  ;;  %vm303_vm6 = vcmask 551936  }
  0x9b   : > { %248 = vst.msk [vmem:[#allocation2 + $0x4] sm:$0xf] %vm247_vm7, %v245_v22  ;;  %vm978_vm7 = vmmov 0  }
  0x9c   : > { %859 = vmatprep.mubr.msk.f32.mxu1 %vm978_vm7, %v976_v46  ;;  %vm701_vm7 = vcmask 1044352  }
  0x9d   : > { %v266_v23 = vpop.permute.xlu0 %265 }
  0x9e   : > { %v189_v24 = vpop.permute.xlu1 %188  ;;  %v267_v27 = vrot.slane %v266_v23, 4 }
  0x9f   : > { %192 = vst.msk [vmem:[#allocation2] sm:$0xf] %vm191_vm8, %v189_v24  ;;  %vm336_vm8 = vcmask 1031168  }
  0xa0   : > { %v269_v30 = vsel %vm268_vm13, %v267_v27, %v266_v23  ;;  %vm416_vm13 = vcmask 752640  }
  0xa1   : > { %v252_v25 = vpop.permute.xlu0 %251 }
  0xa2   : > { %v196_v26 = vpop.permute.xlu1 %195  ;;  %255 = vst.msk [vmem:[#allocation2 + $0x4] sm:$0xf] %vm254_vm9, %v252_v25  ;;  %vm356_vm9 = vcmask 900096  }
  0xa3   : > { %199 = vst.msk [vmem:[#allocation2] sm:$0xf] %vm198_vm10, %v196_v26  ;;  %vm316_vm10 = vcmask 1039360  }
  0xa5   : > { %v259_v28 = vpop.permute.xlu0 %258 }
  0xa6   : > { %v203_v29 = vpop.permute.xlu1 %202  ;;  %262 = vst.msk [vmem:[#allocation2 + $0x4] sm:$0xf] %vm261_vm14, %v259_v28  ;;  %vm436_vm14 = vcmask 744448  }
  0xa7   : > { %206 = vst.msk [vmem:[#allocation2] sm:$0xf] %vm205_vm15, %v203_v29  ;;  %vm456_vm15 = vcmask 736256  }
  0xa8   : > { %274 = vst.msk [vmem:[#allocation2 + $0x4] sm:$0xff] %vm273_vm0, %v269_v30  ;;  %vm493_vm0 = vcmask 588800  }
  0xa9   : > { %v210_v31 = vpop.permute.xlu0 %209 }
  0xaa   : > { %v278_v32 = vpop.permute.xlu1 %277  ;;  %213 = vst.msk [vmem:[#allocation2] sm:$0xf] %vm212_vm1, %v210_v31  ;;  %vm661_vm1 = vcmask 388352  }
  0xab   : > { %281 = vst.msk [vmem:[#allocation2 + $0x8] sm:$0xf] %vm280_vm3, %v278_v32 }
  0xad   : > { %v285_v33 = vpop.permute.xlu0 %284 }
  0xae   : > { %v292_v34 = vpop.permute.xlu1 %291  ;;  %288 = vst.msk [vmem:[#allocation2 + $0x8] sm:$0xf] %vm287_vm4, %v285_v33  ;;  %vm668_vm4 = vcmask 519552  }
  0xaf   : > { %295 = vst.msk [vmem:[#allocation2 + $0x8] sm:$0xf] %vm294_vm5, %v292_v34  ;;  %vm740_vm5 = vcmask 678912  }
  0xb1   : > { %v296_v35 = vld [vmem:[#allocation2] sm:$0xff] }
  0xb2   : > { %301 = vst [vmem:[#allocation3] sm:$0xf] %v296_v35  ;;  %330 = vrot.lane.b32.xlu1 %v296_v35, %s968_s7  ;;  %v329_v36 = vcombine.high %v296_v35, %v296_v35  ;;  %310 = vrot.lane.b32.xlu0 %v296_v35, %s969_s8 }
  0xb4   : > { %302 = vst [vmem:[#allocation3 + $0x8] sm:$0xf] %v329_v36 }
  0xb6   : > { %370 = vrot.lane.b32.xlu1 %v296_v35, %s970_s10  ;;  %350 = vrot.lane.b32.xlu0 %v296_v35, %s971_s11  ;;  %v297_v37 = vld [vmem:[#allocation2 + $0x8] sm:$0xf] }
  0xb7   : > { %304 = vst.msk [vmem:[#allocation3 + $0x10] sm:$0xf] %vm303_vm6, %v297_v37  ;;  %v326_v38 = vld [vmem:[#allocation2 + $0x8] sm:$0xf] }
  0xb8   : > { %v346_v39 = vld [vmem:[#allocation2 + $0x8] sm:$0xf] }
  0xb9   : > { %v366_v41 = vld [vmem:[#allocation2 + $0x8] sm:$0xf]  ;;  %v466_v21 = vld [vmem:[#allocation3] sm:$0xff] }
  0xba   : > { %332 = vrot.lane.b32.xlu1 %v329_v36, %s968_s7  ;;  %390 = vrot.lane.b32.xlu0 %v296_v35, %s972_s12  ;;  %v306_v42 = vld [vmem:[#allocation2 + $0x8] sm:$0xf] }
  0xbb   : > { %v386_v43 = vld [vmem:[#allocation2 + $0x8] sm:$0xf]  ;;  %v467_v17 = vld [vmem:[#allocation3 + $0x8] sm:$0xff] }
  0xbc   : > { %v406_v44 = vld [vmem:[#allocation2 + $0x8] sm:$0xf] }
  0xbd   : > { %v426_v45 = vld [vmem:[#allocation2 + $0x8] sm:$0xf] }
  0xbe   : > { %352 = vrot.lane.b32.xlu1 %v329_v36, %s971_s11  ;;  %312 = vrot.lane.b32.xlu0 %v329_v36, %s969_s8  ;;  %v446_v47 = vld [vmem:[#allocation2 + $0x8] sm:$0xf]  ;;  %v468_v12 = vld [vmem:[#allocation3 + $0x10] sm:$0xff] }
  0xc2   : > { %372 = vrot.lane.b32.xlu1 %v329_v36, %s970_s10  ;;  %334 = vrot.lane.b32.xlu0 %v326_v38, %s968_s7 }
  0xc6   : > { %392 = vrot.lane.b32.xlu1 %v329_v36, %s972_s12  ;;  %354 = vrot.lane.b32.xlu0 %v346_v39, %s971_s11 }
  0xca   : > { %374 = vrot.lane.b32.xlu0 %v366_v41, %s970_s10  ;;  %314 = vrot.lane.b32.xlu1 %v306_v42, %s969_s8 }
  0xce   : > { %394 = vrot.lane.b32.xlu0 %v386_v43, %s972_s12  ;;  %412 = vrot.lane.b32.xlu1 %v329_v36, %s974_s13 }
  0xd2   : > { %414 = vrot.lane.b32.xlu0 %v406_v44, %s974_s13  ;;  %432 = vrot.lane.b32.xlu1 %v329_v36, %s975_s14 }
  0xd6   : > { %434 = vrot.lane.b32.xlu0 %v426_v45, %s975_s14  ;;  %410 = vrot.lane.b32.xlu1 %v296_v35, %s974_s13 }
  0xda   : > { %430 = vrot.lane.b32.xlu0 %v296_v35, %s975_s14  ;;  %452 = vrot.lane.b32.xlu1 %v329_v36, %s977_s16 }
  0xde   : > { %454 = vrot.lane.b32.xlu0 %v446_v47, %s977_s16  ;;  %450 = vrot.lane.b32.xlu1 %v296_v35, %s977_s16 }
 0x124   : > { %v331_v48 = vpop.permute.xlu1 %330  ;;  %v311_v49 = vpop.permute.xlu0 %310 }
 0x128   : > { %v371_v50 = vpop.permute.xlu1 %370  ;;  %v351_v51 = vpop.permute.xlu0 %350 }
 0x12c   : > { %v333_v52 = vpop.permute.xlu1 %332  ;;  %v391_v53 = vpop.permute.xlu0 %390 }
 0x12d   : > { %v337_v54 = vsel %vm336_vm8, %v331_v48, %v333_v52 }
 0x12e   : > { %342 = vst [vmem:[#allocation3 + $0x30] sm:$0xf] %v337_v54 }
 0x130   : > { %v353_v55 = vpop.permute.xlu1 %352  ;;  %v313_v56 = vpop.permute.xlu0 %312 }
 0x131   : > { %v357_v57 = vsel %vm356_vm9, %v351_v51, %v353_v55  ;;  %v317_v58 = vsel %vm316_vm10, %v311_v49, %v313_v56 }
 0x132   : > { %362 = vst [vmem:[#allocation3 + $0x48] sm:$0xf] %v357_v57  ;;  %322 = vst [vmem:[#allocation3 + $0x18] sm:$0xf] %v317_v58 }
 0x134   : > { %v373_v59 = vpop.permute.xlu1 %372  ;;  %v335_v60 = vpop.permute.xlu0 %334 }
 0x135   : > { %v377_v61 = vsel %vm376_vm11, %v371_v50, %v373_v59  ;;  %v338_v62 = vsel %vm336_vm8, %v333_v52, %v335_v60  ;;  %344 = vst.msk [vmem:[#allocation3 + $0x40] sm:$0xf] %vm303_vm6, %v335_v60  ;;  %v472_v34 = vld [vmem:[#allocation3 + $0x30] sm:$0xff]  ;;  %vm691_vm8 = vcmask 793600  }
 0x136   : > { %382 = vst [vmem:[#allocation3 + $0x60] sm:$0xf] %v377_v61  ;;  %343 = vst [vmem:[#allocation3 + $0x38] sm:$0xf] %v338_v62  ;;  %v465_v61 = vld [vmem:[%s1123_s0] sm:$0xf] }
 0x138   : > { %v393_v63 = vpop.permute.xlu1 %392  ;;  %v355_v0 = vpop.permute.xlu0 %354 }
 0x139   : > { %v397_v1 = vsel %vm396_vm12, %v391_v53, %v393_v63  ;;  %v358_v2 = vsel %vm356_vm9, %v353_v55, %v355_v0  ;;  %364 = vst.msk [vmem:[#allocation3 + $0x58] sm:$0xf] %vm303_vm6, %v355_v0  ;;  %v469_v14 = vld [vmem:[#allocation3 + $0x18] sm:$0xff]  ;;  %v475_v29 = vld [vmem:[#allocation3 + $0x48] sm:$0xff] }
 0x13a   : > { %402 = vst [vmem:[#allocation3 + $0x78] sm:$0xf] %v397_v1  ;;  %363 = vst [vmem:[#allocation3 + $0x50] sm:$0xf] %v358_v2  ;;  %v864_v23 = vpack.c.bf16 %v469_v14, %v466_v21  ;;  %v868_v36 = vpack.c.bf16 %v475_v29, %v472_v34 }
 0x13c   : > { %v315_v3 = vpop.permute.xlu1 %314  ;;  %v375_v4 = vpop.permute.xlu0 %374  ;;  %v474_v28 = vld [vmem:[#allocation3 + $0x40] sm:$0xff] }
 0x13d   : > { %v318_v5 = vsel %vm316_vm10, %v313_v56, %v315_v3  ;;  %324 = vst.msk [vmem:[#allocation3 + $0x28] sm:$0xf] %vm303_vm6, %v315_v3  ;;  %v378_v6 = vsel %vm376_vm11, %v373_v59, %v375_v4  ;;  %384 = vst.msk [vmem:[#allocation3 + $0x70] sm:$0xf] %vm303_vm6, %v375_v4  ;;  %v473_v24 = vld [vmem:[#allocation3 + $0x38] sm:$0xff]  ;;  %v478_v47 = vld [vmem:[#allocation3 + $0x60] sm:$0xff] }
 0x13e   : > { %323 = vst [vmem:[#allocation3 + $0x20] sm:$0xf] %v318_v5  ;;  %383 = vst [vmem:[#allocation3 + $0x68] sm:$0xf] %v378_v6 }
 0x140   : > { %v413_v7 = vpop.permute.xlu1 %412  ;;  %v395_v8 = vpop.permute.xlu0 %394  ;;  %v477_v22 = vld [vmem:[#allocation3 + $0x58] sm:$0xff] }
 0x141   : > { %v398_v9 = vsel %vm396_vm12, %v393_v63, %v395_v8  ;;  %404 = vst.msk [vmem:[#allocation3 + $0x88] sm:$0xf] %vm303_vm6, %v395_v8  ;;  %v476_v19 = vld [vmem:[#allocation3 + $0x50] sm:$0xff]  ;;  %v882_v32 = vpack.c.bf16 %v477_v22, %v474_v28  ;;  %v481_v43 = vld [vmem:[#allocation3 + $0x78] sm:$0xff] }
 0x142   : > { %403 = vst [vmem:[#allocation3 + $0x80] sm:$0xf] %v398_v9  ;;  %v866_v27 = vpack.c.bf16 %v476_v19, %v473_v24  ;;  %v872_v48 = vpack.c.bf16 %v481_v43, %v478_v47 }
 0x144   : > { %v433_v10 = vpop.permute.xlu1 %432  ;;  %v415_v11 = vpop.permute.xlu0 %414  ;;  %v471_v13 = vld [vmem:[#allocation3 + $0x28] sm:$0xff]  ;;  %v480_v42 = vld [vmem:[#allocation3 + $0x70] sm:$0xff] }
 0x145   : > { %v418_v15 = vsel %vm416_vm13, %v413_v7, %v415_v11  ;;  %424 = vst.msk [vmem:[#allocation3 + $0xa0] sm:$0xf] %vm303_vm6, %v415_v11  ;;  %v879_v16 = vpack.c.bf16 %v471_v13, %v468_v12  ;;  %v470_v18 = vld [vmem:[#allocation3 + $0x20] sm:$0xff]  ;;  %v479_v37 = vld [vmem:[#allocation3 + $0x68] sm:$0xff] }
 0x146   : > { %423 = vst [vmem:[#allocation3 + $0x98] sm:$0xf] %v418_v15  ;;  %v862_v20 = vpack.c.bf16 %v470_v18, %v467_v17 }
 0x147   : > { %880 = vmatpush3.bf16.msra.mxu1 %v879_v16 }
 0x148   : > { %v411_v25 = vpop.permute.xlu1 %410  ;;  %863 = vmatprep.subr.bf16.mxu0 %v862_v20  ;;  %v435_v26 = vpop.permute.xlu0 %434  ;;  %881 = vmatprep.subr.bf16.mxu1 %v973_v40  ;;  %v483_v35 = vld [vmem:[#allocation3 + $0x88] sm:$0xff] }
 0x149   : > { %v417_v30 = vsel %vm416_vm13, %v411_v25, %v413_v7  ;;  %v438_v31 = vsel %vm436_vm14, %v433_v10, %v435_v26  ;;  %444 = vst.msk [vmem:[#allocation3 + $0xb8] sm:$0xf] %vm303_vm6, %v435_v26  ;;  %865 = vmatpush1.bf16.msra.mxu0 %v864_v23  ;;  %v482_v33 = vld [vmem:[#allocation3 + $0x80] sm:$0xff]  ;;  %v885_v45 = vpack.c.bf16 %v483_v35, %v480_v42 }
 0x14a   : > { %422 = vst [vmem:[#allocation3 + $0x90] sm:$0xf] %v417_v30  ;;  %443 = vst [vmem:[#allocation3 + $0xb0] sm:$0xf] %v438_v31  ;;  %867 = vmatprep.subr.bf16.mxu0 %v866_v27  ;;  %v870_v41 = vpack.c.bf16 %v482_v33, %v479_v37 }
 0x14b   : > { %883 = vmatpush3.bf16.msra.mxu1 %v882_v32 }
 0x14c   : > { %v453_v38 = vpop.permute.xlu1 %452  ;;  %v431_v39 = vpop.permute.xlu0 %430  ;;  %884 = vmatprep.subr.bf16.mxu1 %v973_v40  ;;  %v486_v51 = vld [vmem:[#allocation3 + $0xa0] sm:$0xff] }
 0x14d   : > { %v437_v44 = vsel %vm436_vm14, %v431_v39, %v433_v10  ;;  %869 = vmatpush1.bf16.msra.mxu0 %v868_v36  ;;  %v485_v56 = vld [vmem:[#allocation3 + $0x98] sm:$0xff] }
 0x14e   : > { %442 = vst [vmem:[#allocation3 + $0xa8] sm:$0xf] %v437_v44  ;;  %871 = vmatprep.subr.bf16.mxu0 %v870_v41 }
 0x14f   : > { %886 = vmatpush3.bf16.msra.mxu1 %v885_v45 }
 0x150   : > { %v451_v49 = vpop.permute.xlu1 %450  ;;  %v455_v50 = vpop.permute.xlu0 %454  ;;  %887 = vmatprep.subr.bf16.mxu1 %v973_v40  ;;  %v489_v52 = vld [vmem:[#allocation3 + $0xb8] sm:$0xff] }
 0x151   : > { %v457_v53 = vsel %vm456_vm15, %v451_v49, %v453_v38  ;;  %v458_v54 = vsel %vm456_vm15, %v453_v38, %v455_v50  ;;  %464 = vst.msk [vmem:[#allocation3 + $0xd0] sm:$0xf] %vm303_vm6, %v455_v50  ;;  %873 = vmatpush1.bf16.msra.mxu0 %v872_v48  ;;  %v888_v55 = vpack.c.bf16 %v489_v52, %v486_v51  ;;  %v488_v57 = vld [vmem:[#allocation3 + $0xb0] sm:$0xff] }
 0x152   : > { %462 = vst [vmem:[#allocation3 + $0xc0] sm:$0xf] %v457_v53  ;;  %463 = vst [vmem:[#allocation3 + $0xc8] sm:$0xf] %v458_v54  ;;  %v874_v58 = vpack.c.bf16 %v488_v57, %v485_v56  ;;  %v484_v59 = vld [vmem:[#allocation3 + $0x90] sm:$0xff] }
 0x153   : > { %889 = vmatpush3.bf16.msra.mxu1 %v888_v55 }
 0x154   : > { %875 = vmatprep.subr.bf16.mxu0 %v874_v58  ;;  %857 = vmatprep.subr.mxu1 %v976_v46 }
 0x155   : > { %v487_v60 = vld [vmem:[#allocation3 + $0xa8] sm:$0xff] }
 0x156   : > { %v876_v40 = vpack.c.bf16 %v487_v60, %v484_v59 }
 0x158   : > { %877 = vmatpush1.bf16.msra.mxu0 %v876_v40  ;;  %v492_v62 = vld [vmem:[#allocation3 + $0xd0] sm:$0xff] }
 0x159   : > { %858 = vmatpush3.msra.mxu1 %v492_v62  ;;  %v491_v63 = vld [vmem:[#allocation3 + $0xc8] sm:$0xff]  ;;  %v490_v0 = vld [vmem:[#allocation3 + $0xc0] sm:$0xff] }
 0x15a   : > { %513 = vmatprep.subr.mxu0 %v491_v63  ;;  %860 = vmatmul.mubr.msk.f32.vlgmr.msra.gmra.mrb[0].mxu1 %vm493_vm0, %v465_v61 }
 0x15c   : > { %514 = vmatpush1.msra.mxu0 %v490_v0 }
 0x15d   : > { %825 = vmatmul.mubr.msk.f32.vlgmr.msra.gmra.mrb[0].mxu0 %vm493_vm0, %v465_v61 }
 0x22d   : > { %v634_v1 = vpop.f32.mrb[0].mxu1 }
 0x22e   : > { %643 = vst.msk [vmem:[#allocation4 + $0x8] sm:$0xf] %vm303_vm6, %v634_v1  ;;  %v861_v46 = vpop.f32.mrb[1].mxu1  ;;  %vm694_vm6 = vcmask 913152  }
 0x230   : > { %v563_v2 = vpop.f32.mrb[0].mxu0 }
 0x231   : > { %v565_v3 = vpop.f32.mrb[1].mxu0 }
 0x232   : > { %v640_v4 = vcombine.low %v563_v2, %v565_v3  ;;  %v942_v19 = vcombine.low %v565_v3, %v565_v3 }
 0x234   : > { %642 = vst [vmem:[#allocation4] sm:$0xff] %v640_v4 }
 0x235   : > { %v744_v5 = vld [vmem:[#allocation4 + $0x8] sm:$0xf] }
 0x236   : > { %746 = vrot.lane.b32.xlu1 %v744_v5, %s979_s20  ;;  %v750_v20 = vld [vmem:[#allocation4 + $0x8] sm:$0xf] }
 0x23b   : > { %v703_v6 = vld [vmem:[#allocation4 + $0x4] sm:$0xf]  ;;  %v644_v7 = vld [vmem:[#allocation4] sm:$0xf] }
 0x23c   : > { %705 = vrot.lane.b32.xlu1 %v703_v6, %s980_s21  ;;  %646 = vrot.lane.b32.xlu0 %v644_v7, %s970_s10  ;;  %v709_v8 = vld [vmem:[#allocation4 + $0x4] sm:$0xf]  ;;  %v650_v9 = vld [vmem:[#allocation4] sm:$0xf] }
 0x23d   : > { %v715_v10 = vld [vmem:[#allocation4 + $0x4] sm:$0xf]  ;;  %v656_v11 = vld [vmem:[#allocation4] sm:$0xf] }
 0x23e   : > { %v721_v12 = vld [vmem:[#allocation4 + $0x4] sm:$0xf]  ;;  %v663_v13 = vld [vmem:[#allocation4] sm:$0xf] }
 0x23f   : > { %v727_v14 = vld [vmem:[#allocation4 + $0x4] sm:$0xf]  ;;  %v670_v15 = vld [vmem:[#allocation4] sm:$0xf] }
 0x240   : > { %711 = vrot.lane.b32.xlu1 %v709_v8, %s975_s14  ;;  %652 = vrot.lane.b32.xlu0 %v650_v9, %s981_s22  ;;  %v733_v16 = vld [vmem:[#allocation4 + $0x4] sm:$0xff]  ;;  %v677_v18 = vld [vmem:[#allocation4] sm:$0xf] }
 0x241   : > { %v735_v17 = vcombine.high %v733_v16, %v733_v16  ;;  %v696_v21 = vld [vmem:[#allocation4 + $0x4] sm:$0xf] }
 0x244   : > { %717 = vrot.lane.b32.xlu1 %v715_v10, %s982_s23  ;;  %658 = vrot.lane.b32.xlu0 %v656_v11, %s983_s24 }
 0x248   : > { %723 = vrot.lane.b32.xlu1 %v721_v12, %s984_s25  ;;  %665 = vrot.lane.b32.xlu0 %v663_v13, %s985_s26 }
 0x24c   : > { %729 = vrot.lane.b32.xlu1 %v727_v14, %s986_s27  ;;  %672 = vrot.lane.b32.xlu0 %v670_v15, %s987_s28 }
 0x250   : > { %687 = vrot.lane.b32.xlu1 %v640_v4, %s988_s29  ;;  %736 = vrot.lane.b32.xlu0 %v733_v16, %s989_s30 }
 0x254   : > { %738 = vrot.lane.b32.xlu1 %v735_v17, %s989_s30  ;;  %679 = vrot.lane.b32.xlu0 %v677_v18, %s990_s3 }
 0x258   : > { %752 = vrot.lane.b32.xlu1 %v750_v20, %s991_s4  ;;  %689 = vrot.lane.b32.xlu0 %v942_v19, %s988_s29 }
 0x25c   : > { %698 = vrot.lane.b32.xlu0 %v696_v21, %s992_s5 }
 0x2a8   : > { %v747_v22 = vpop.permute.xlu1 %746 }
 0x2ae   : > { %v706_v23 = vpop.permute.xlu1 %705  ;;  %v647_v24 = vpop.permute.xlu0 %646 }
 0x2af   : > { %708 = vst.msk [vmem:[%s1024_s18 + $0x8] sm:$0xf] %vm219_vm2, %v706_v23  ;;  %649 = vst.msk [vmem:[%s1024_s18] sm:$0xf] %vm219_vm2, %v647_v24  ;;  %vm675_vm2 = vcmask 650752  }
 0x2b2   : > { %v712_v25 = vpop.permute.xlu1 %711  ;;  %v653_v26 = vpop.permute.xlu0 %652 }
 0x2b3   : > { %714 = vst.msk [vmem:[%s1024_s18 + $0x8] sm:$0xf] %vm280_vm3, %v712_v25  ;;  %655 = vst.msk [vmem:[%s1024_s18] sm:$0xf] %vm280_vm3, %v653_v26  ;;  %vm682_vm3 = vcmask 781952  }
 0x2b6   : > { %v718_v27 = vpop.permute.xlu1 %717  ;;  %v659_v28 = vpop.permute.xlu0 %658 }
 0x2b7   : > { %720 = vst.msk [vmem:[%s1024_s18 + $0x8] sm:$0xf] %vm661_vm1, %v718_v27  ;;  %662 = vst.msk [vmem:[%s1024_s18] sm:$0xf] %vm661_vm1, %v659_v28 }
 0x2ba   : > { %v724_v29 = vpop.permute.xlu1 %723  ;;  %v666_v30 = vpop.permute.xlu0 %665 }
 0x2bb   : > { %726 = vst.msk [vmem:[%s1024_s18 + $0x8] sm:$0xf] %vm668_vm4, %v724_v29  ;;  %669 = vst.msk [vmem:[%s1024_s18] sm:$0xf] %vm668_vm4, %v666_v30 }
 0x2be   : > { %v730_v31 = vpop.permute.xlu1 %729  ;;  %v673_v32 = vpop.permute.xlu0 %672 }
 0x2bf   : > { %732 = vst.msk [vmem:[%s1024_s18 + $0x8] sm:$0xf] %vm675_vm2, %v730_v31  ;;  %676 = vst.msk [vmem:[%s1024_s18] sm:$0xf] %vm675_vm2, %v673_v32 }
 0x2c2   : > { %v688_v33 = vpop.permute.xlu1 %687  ;;  %v737_v34 = vpop.permute.xlu0 %736 }
 0x2c6   : > { %v739_v35 = vpop.permute.xlu1 %738  ;;  %v680_v36 = vpop.permute.xlu0 %679 }
 0x2c7   : > { %v741_v37 = vsel %vm740_vm5, %v737_v34, %v739_v35  ;;  %683 = vst.msk [vmem:[%s1024_s18] sm:$0xf] %vm682_vm3, %v680_v36 }
 0x2c8   : > { %743 = vst.msk [vmem:[%s1024_s18 + $0x8] sm:$0xf] %vm682_vm3, %v741_v37 }
 0x2c9   : > { %749 = vst.msk [vmem:[%s1024_s18 + $0x8] sm:$0xf] %vm694_vm6, %v747_v22 }
 0x2ca   : > { %v753_v38 = vpop.permute.xlu1 %752  ;;  %v690_v39 = vpop.permute.xlu0 %689 }
 0x2cb   : > { %755 = vst.msk [vmem:[%s1024_s18 + $0x8] sm:$0xf] %vm701_vm7, %v753_v38  ;;  %v692_v41 = vsel %vm691_vm8, %v688_v33, %v690_v39 }
 0x2cc   : > { %695 = vst.msk [vmem:[%s1024_s18] sm:$0xf] %vm694_vm6, %v692_v41 }
 0x2ce   : > { %v699_v42 = vpop.permute.xlu0 %698 }
 0x2cf   : > { %702 = vst.msk [vmem:[%s1024_s18] sm:$0xf] %vm701_vm7, %v699_v42 }
 0x2d6   : > { %v756_v43 = vld [vmem:[%s1019_s15] sm:$0xf0]  ;;  %v757_v44 = vld [vmem:[%s1019_s15 + $0x8] sm:$0xf0] }
 0x2d7   : > { %758 = vst [vmem:[%s1024_s18] sm:$0xf0] %v756_v43  ;;  %759 = vst [vmem:[%s1024_s18 + $0x8] sm:$0xf0] %v757_v44 }
 0x2d8 PF: > { %s12_s9 = sadd.s32 1, %s949_s9  }
 0x2d9   : > { %p9_p5 = scmp.ge.s32.totalorder %s12_s9, 4  }
 0x2db   :  { %11 = sbr.rel (!%p9_p5) target bundleno = 1 (0x1), region = 62 }

</bundles_post_ra>
